<compile_context>
chip_gen: v6e
topology: v6e:2x2x1
jax: 0.10.0
libtpu: 0.0.40
codegen_flags: <defaults>
</compile_context>

<pallas_src>
from functools import partial

import jax
import jax.numpy as jnp
from jax.experimental import pallas as pl
from jax.experimental.pallas import tpu as pltpu


def channel_attention_kernel(x_ref, w1t_ref, w2t_ref, o_ref,
                             sum_acc, max_acc, *, total_s, s_tile):
    # x_ref   : (1, C, S_tile) block for one batch element / one spatial tile
    # w1t_ref : (C, Hdim)  = Conv3d#1 weight (Hdim, C, 1,1,1) transposed
    # w2t_ref : (Hdim, C)  = Conv3d#2 weight (C, Hdim, 1,1,1) transposed
    # o_ref   : (1, 1, C)
    # sum_acc : (1, C) f32 scratch   max_acc : (1, C) f32 scratch
    k = pl.program_id(1)
    nk = pl.num_programs(1)

    @pl.when(k == 0)
    def _init():
        sum_acc[...] = jnp.zeros_like(sum_acc)
        max_acc[...] = jnp.full_like(max_acc, -jnp.inf)

    x = x_ref[0].astype(jnp.float32)                       # (C, S_tile), f32 accumulation

    if total_s % s_tile != 0:
        # Last tile is partial: mask padded lanes (0 for sum, -inf for max).
        start = k * s_tile
        lane = jax.lax.broadcasted_iota(jnp.int32, x.shape, dimension=1)
        valid = (start + lane) < total_s
        x_sum = jnp.where(valid, x, 0.0)
        x_max = jnp.where(valid, x, -jnp.inf)
    else:
        x_sum = x
        x_max = x

    sum_acc[...] += jnp.sum(x_sum, axis=1, keepdims=True).T          # (1, C)
    max_acc[...] = jnp.maximum(max_acc[...],
                               jnp.max(x_max, axis=1, keepdims=True).T)

    @pl.when(k == nk - 1)
    def _finalize():
        avg = sum_acc[...] * (1.0 / total_s)                         # (1, C)  AdaptiveAvgPool3d
        mx = max_acc[...]                                            # (1, C)  AdaptiveMaxPool3d
        stacked = jnp.concatenate([avg, mx], axis=0)                 # (2, C)
        h = jnp.maximum(
            jnp.dot(stacked, w1t_ref[...], preferred_element_type=jnp.float32),
            0.0)                                                     # (2, Hdim)  conv1 + ReLU
        y = jnp.dot(h, w2t_ref[...], preferred_element_type=jnp.float32)  # (2, C) conv2
        out = jax.nn.sigmoid(y[0:1] + y[1:2])                        # (1, C)
        o_ref[...] = out.reshape(o_ref.shape).astype(o_ref.dtype)


def channel_attention(x_ncdhw, w1, w2, *, s_tile=None, target_block_bytes=2 << 20):
    """x_ncdhw: (N, C, D, H, W); w1: (Hdim, C, 1,1,1); w2: (C, Hdim, 1,1,1)."""
    N, C, D, H, W = x_ncdhw.shape
    S = D * H * W
    hidden = w1.shape[0]

    # Free, contiguous reshape — no HBM transpose of x.
    x_ncs = x_ncdhw.reshape(N, C, S)                       # (N, C, S)
    w1t = w1.reshape(hidden, C).T                          # (C, hidden)   (tiny)
    w2t = w2.reshape(C, hidden).T                          # (hidden, C)   (tiny)

    # Choose the spatial tile: lane-aligned, ~target_block_bytes per block.
    LANE = 128
    itemsize = jnp.dtype(x_ncdhw.dtype).itemsize
    if s_tile is None:
        by_target = max(LANE, (target_block_bytes // (C * itemsize)) // LANE * LANE)
        s_tile = min(by_target, pl.cdiv(S, LANE) * LANE)
    s_tile = int(s_tile)
    if s_tile >= S or S <= LANE:
        s_tile = S                                         # single full-extent tile
    else:
        s_tile = max(LANE, (s_tile // LANE) * LANE)        # interior tiles must be lane-aligned
    grid_k = pl.cdiv(S, s_tile)

    block_bytes = C * s_tile * itemsize
    vmem_limit = int(min(48 << 20, max(16 << 20, 4 * block_bytes + (2 << 20))))

    kernel = partial(channel_attention_kernel, total_s=S, s_tile=s_tile)

    out = pl.pallas_call(
        kernel,
        out_shape=jax.ShapeDtypeStruct((N, 1, C), x_ncdhw.dtype),
        grid_spec=pltpu.PrefetchScalarGridSpec(
            num_scalar_prefetch=0,
            grid=(N, grid_k),                               # reduction axis last
            in_specs=[
                pl.BlockSpec((1, C, s_tile), lambda n, k: (n, 0, k)),
                pl.BlockSpec((C, hidden), lambda n, k: (0, 0)),
                pl.BlockSpec((hidden, C), lambda n, k: (0, 0)),
            ],
            out_specs=pl.BlockSpec((1, 1, C), lambda n, k: (n, 0, 0)),
            scratch_shapes=[
                pltpu.VMEM((1, C), jnp.float32),            # running sum
                pltpu.VMEM((1, C), jnp.float32),            # running max
            ],
        ),
        compiler_params=pltpu.CompilerParams(
            dimension_semantics=("parallel", "arbitrary"),
            vmem_limit_bytes=vmem_limit,
        ),
    )(x_ncs, w1t, w2t)

    return out.reshape(N, C, 1, 1, 1)


def channel_attention_ref(x, w1, w2):
    """Pure-JAX reference of the PyTorch forward (for validation)."""
    N, C, D, H, W = x.shape
    hidden = w1.shape[0]
    w1m = w1.reshape(hidden, C)
    w2m = w2.reshape(C, hidden)
    avg = jnp.mean(x, axis=(2, 3, 4))                      # (N, C)
    mx = jnp.max(x, axis=(2, 3, 4))                        # (N, C)

    def fc(v):
        h = jnp.maximum(v @ w1m.T, 0.0)
        return h @ w2m.T

    out = jax.nn.sigmoid(fc(avg) + fc(mx))
    return out.reshape(N, C, 1, 1, 1)


if __name__ == "__main__":
    # Small, TPU-friendly shapes consistent with ChannelAttention(in_planes=64, ratio=32)
    N, C = 2, 64
    RATIO = 32
    HIDDEN = C // RATIO  # 2

    key = jax.random.PRNGKey(0)
    kx1, kx2, k1, k2 = jax.random.split(key, 4)

    # Deterministic synthetic conv weights (bias=False in the module):
    #   Conv3d(C, C//ratio, 1) weight: (HIDDEN, C, 1, 1, 1)
    #   Conv3d(C//ratio, C, 1) weight: (C, HIDDEN, 1, 1, 1)
    w1 = jax.random.normal(k1, (HIDDEN, C, 1, 1, 1), dtype=jnp.float32) * 0.1
    w2 = jax.random.normal(k2, (C, HIDDEN, 1, 1, 1), dtype=jnp.float32) * 0.1

    # Test 1: S = 4*8*8 = 256 — exercises the multi-step reduction axis (2 tiles).
    x1 = jax.random.normal(kx1, (N, C, 4, 8, 8), dtype=jnp.float32)
    out1 = channel_attention(x1, w1, w2, s_tile=128)
    jax.block_until_ready(out1)
    ref1 = channel_attention_ref(x1, w1, w2)
    assert out1.shape == (N, C, 1, 1, 1)
    assert jnp.allclose(out1, ref1, atol=1e-5, rtol=1e-5)

    # Test 2: S = 5*6*7 = 210 — exercises the partial-tile masking path.
    x2 = jax.random.normal(kx2, (N, C, 5, 6, 7), dtype=jnp.float32)
    out2 = channel_attention(x2, w1, w2, s_tile=128)
    jax.block_until_ready(out2)
    ref2 = channel_attention_ref(x2, w1, w2)
    assert jnp.allclose(out2, ref2, atol=1e-5, rtol=1e-5)

    print("KERNEL_OK")
</pallas_src>

<mosaic_0001>
module attributes {stable_mosaic.version = 11 : i64} {
  func.func @channel_attention_kernel(%arg0: i32, %arg1: i32, %arg2: memref<1x64x128xf32, #tpu.memory_space<vmem>>, %arg3: memref<64x2xf32, #tpu.memory_space<vmem>>, %arg4: memref<2x64xf32, #tpu.memory_space<vmem>>, %arg5: memref<1x1x64xf32, #tpu.memory_space<vmem>>, %arg6: memref<1x64xf32, #tpu.memory_space<vmem>>, %arg7: memref<1x64xf32, #tpu.memory_space<vmem>>) attributes {dimension_semantics = [#tpu.dimension_semantics<parallel>, #tpu.dimension_semantics<arbitrary>], iteration_bounds = array<i64: 2, 2>, scalar_prefetch = 0 : i64, scratch_operands = 2 : i64, tpu.core_type = #tpu.core_type<tc>, window_params = [{transform_indices = @transform_0, window_bounds = array<i64: 1, 64, 128>}, {pipeline_mode = #tpu.pipeline_mode<synchronous>, transform_indices = @transform_1, window_bounds = array<i64: 64, 2>}, {pipeline_mode = #tpu.pipeline_mode<synchronous>, transform_indices = @transform_2, window_bounds = array<i64: 2, 64>}, {transform_indices = @transform_3, window_bounds = array<i64: 1, 1, 64>}]} {
    %c0_i32 = arith.constant 0 : i32
    %0 = arith.cmpi eq, %arg1, %c0_i32 : i32
    %1 = arith.extui %0 : i1 to i32
    %c0_i32_0 = arith.constant 0 : i32
    %2 = arith.cmpi ne, %1, %c0_i32_0 : i32
    scf.if %2 {
      %cst_13 = arith.constant 0.000000e+00 : f32
      %20 = vector.broadcast %cst_13 : f32 to vector<1x64xf32>
      %c0_14 = arith.constant 0 : index
      %c0_15 = arith.constant 0 : index
      %21 = vector.load %arg6[%c0_14, %c0_15] : memref<1x64xf32, #tpu.memory_space<vmem>>, vector<1x64xf32>
      tpu.vector_store %arg6[%c0_14, %c0_15], %20 {strides = array<i32>} : memref<1x64xf32, #tpu.memory_space<vmem>>, vector<1x64xf32>,
      %cst_16 = arith.constant 0xFF800000 : f32
      %22 = vector.broadcast %cst_16 : f32 to vector<1x64xf32>
      %c0_17 = arith.constant 0 : index
      %c0_18 = arith.constant 0 : index
      %23 = vector.load %arg7[%c0_17, %c0_18] : memref<1x64xf32, #tpu.memory_space<vmem>>, vector<1x64xf32>
      tpu.vector_store %arg7[%c0_17, %c0_18], %22 {strides = array<i32>} : memref<1x64xf32, #tpu.memory_space<vmem>>, vector<1x64xf32>,
    } else {
    }
    %c0 = arith.constant 0 : index
    %c0_1 = arith.constant 0 : index
    %c0_2 = arith.constant 0 : index
    %3 = vector.load %arg2[%c0, %c0_1, %c0_2] : memref<1x64x128xf32, #tpu.memory_space<vmem>>, vector<1x64x128xf32>
    %4 = vector.shape_cast %3 : vector<1x64x128xf32> to vector<64x128xf32>
    %c0_3 = arith.constant 0 : index
    %c0_4 = arith.constant 0 : index
    %5 = vector.load %arg6[%c0_3, %c0_4] : memref<1x64xf32, #tpu.memory_space<vmem>>, vector<1x64xf32>
    %cst = arith.constant dense<0.000000e+00> : vector<64xf32>
    %6 = vector.multi_reduction <add>, %4, %cst [1] : vector<64x128xf32> to vector<64xf32>
    %7 = vector.shape_cast %6 : vector<64xf32> to vector<64x1xf32>
    %8 = tpu.transpose %7, [1, 0] : vector<64x1xf32> -> vector<1x64xf32>
    %9 = arith.addf %5, %8 : vector<1x64xf32>
    %c0_5 = arith.constant 0 : index
    %c0_6 = arith.constant 0 : index
    %10 = vector.load %arg6[%c0_5, %c0_6] : memref<1x64xf32, #tpu.memory_space<vmem>>, vector<1x64xf32>
    tpu.vector_store %arg6[%c0_5, %c0_6], %9 {strides = array<i32>} : memref<1x64xf32, #tpu.memory_space<vmem>>, vector<1x64xf32>,
    %c0_7 = arith.constant 0 : index
    %c0_8 = arith.constant 0 : index
    %11 = vector.load %arg7[%c0_7, %c0_8] : memref<1x64xf32, #tpu.memory_space<vmem>>, vector<1x64xf32>
    %cst_9 = arith.constant dense<0xFF800000> : vector<64xf32>
    %12 = vector.multi_reduction <maximumf>, %4, %cst_9 [1] : vector<64x128xf32> to vector<64xf32>
    %13 = vector.shape_cast %12 : vector<64xf32> to vector<64x1xf32>
    %14 = tpu.transpose %13, [1, 0] : vector<64x1xf32> -> vector<1x64xf32>
    %15 = arith.maximumf %11, %14 : vector<1x64xf32>
    %c0_10 = arith.constant 0 : index
    %c0_11 = arith.constant 0 : index
    %16 = vector.load %arg7[%c0_10, %c0_11] : memref<1x64xf32, #tpu.memory_space<vmem>>, vector<1x64xf32>
    tpu.vector_store %arg7[%c0_10, %c0_11], %15 {strides = array<i32>} : memref<1x64xf32, #tpu.memory_space<vmem>>, vector<1x64xf32>,
    %c1_i32 = arith.constant 1 : i32
    %17 = arith.cmpi eq, %arg1, %c1_i32 : i32
    %18 = arith.extui %17 : i1 to i32
    %c0_i32_12 = arith.constant 0 : i32
    %19 = arith.cmpi ne, %18, %c0_i32_12 : i32
    scf.if %19 {
      %c0_13 = arith.constant 0 : index
      %c0_14 = arith.constant 0 : index
      %20 = vector.load %arg6[%c0_13, %c0_14] : memref<1x64xf32, #tpu.memory_space<vmem>>, vector<1x64xf32>
      %cst_15 = arith.constant 3.906250e-03 : f32
      %21 = vector.broadcast %cst_15 : f32 to vector<1x64xf32>
      %22 = arith.mulf %20, %21 : vector<1x64xf32>
      %c0_16 = arith.constant 0 : index
      %c0_17 = arith.constant 0 : index
      %23 = vector.load %arg7[%c0_16, %c0_17] : memref<1x64xf32, #tpu.memory_space<vmem>>, vector<1x64xf32>
      %24 = tpu.concatenate %22, %23 in 0 : vector<1x64xf32>, vector<1x64xf32> -> vector<2x64xf32>
      %c0_18 = arith.constant 0 : index
      %c0_19 = arith.constant 0 : index
      %25 = vector.load %arg3[%c0_18, %c0_19] : memref<64x2xf32, #tpu.memory_space<vmem>>, vector<64x2xf32>
      %cst_20 = arith.constant dense<0.000000e+00> : vector<2x2xf32>
      %26 = tpu.matmul %24, %25, %cst_20 {dimension_numbers = #tpu.dot_dimension_numbers<[1], [0], [0], [1], [0, 0, 1, 1], [], []>} : vector<2x64xf32>, vector<64x2xf32>, vector<2x2xf32> -> vector<2x2xf32>
      %cst_21 = arith.constant 0.000000e+00 : f32
      %27 = vector.broadcast %cst_21 : f32 to vector<2x2xf32>
      %28 = arith.maximumf %26, %27 : vector<2x2xf32>
      %c0_22 = arith.constant 0 : index
      %c0_23 = arith.constant 0 : index
      %29 = vector.load %arg4[%c0_22, %c0_23] : memref<2x64xf32, #tpu.memory_space<vmem>>, vector<2x64xf32>
      %cst_24 = arith.constant dense<0.000000e+00> : vector<2x64xf32>
      %30 = tpu.matmul %28, %29, %cst_24 {dimension_numbers = #tpu.dot_dimension_numbers<[1], [0], [0], [1], [0, 0, 1, 1], [], []>} : vector<2x2xf32>, vector<2x64xf32>, vector<2x64xf32> -> vector<2x64xf32>
      %31 = vector.extract_strided_slice %30 {offsets = [0, 0], sizes = [1, 64], strides = [1, 1]} : vector<2x64xf32> to vector<1x64xf32>
      %32 = vector.extract_strided_slice %30 {offsets = [1, 0], sizes = [1, 64], strides = [1, 1]} : vector<2x64xf32> to vector<1x64xf32>
      %33 = arith.addf %31, %32 : vector<1x64xf32>
      %34 = arith.negf %33 : vector<1x64xf32>
      %35 = math.exp %34 : vector<1x64xf32>
      %cst_25 = arith.constant 1.000000e+00 : f32
      %36 = vector.broadcast %cst_25 : f32 to vector<1x64xf32>
      %37 = arith.addf %36, %35 : vector<1x64xf32>
      %38 = arith.divf %36, %37 : vector<1x64xf32>
      %39 = vector.shape_cast %38 : vector<1x64xf32> to vector<1x1x64xf32>
      %c0_26 = arith.constant 0 : index
      %c0_27 = arith.constant 0 : index
      %c0_28 = arith.constant 0 : index
      %40 = vector.load %arg5[%c0_26, %c0_27, %c0_28] : memref<1x1x64xf32, #tpu.memory_space<vmem>>, vector<1x1x64xf32>
      tpu.vector_store %arg5[%c0_26, %c0_27, %c0_28], %39 {strides = array<i32>} : memref<1x1x64xf32, #tpu.memory_space<vmem>>, vector<1x1x64xf32>,
    } else {
    }
    return
  }
  func.func @transform_0(%arg0: i32, %arg1: i32) -> (i32, i32, i32) {
    %c0_i32 = arith.constant 0 : i32
    %c0_i32_0 = arith.constant 0 : i32
    return %arg0, %c0_i32, %arg1 : i32, i32, i32
  }
  func.func @transform_1(%arg0: i32, %arg1: i32) -> (i32, i32) {
    %c0_i32 = arith.constant 0 : i32
    %c0_i32_0 = arith.constant 0 : i32
    %c0_i32_1 = arith.constant 0 : i32
    return %c0_i32, %c0_i32_0 : i32, i32
  }
  func.func @transform_2(%arg0: i32, %arg1: i32) -> (i32, i32) {
    %c0_i32 = arith.constant 0 : i32
    %c0_i32_0 = arith.constant 0 : i32
    %c0_i32_1 = arith.constant 0 : i32
    return %c0_i32, %c0_i32_0 : i32, i32
  }
  func.func @transform_3(%arg0: i32, %arg1: i32) -> (i32, i32, i32) {
    %c0_i32 = arith.constant 0 : i32
    %c0_i32_0 = arith.constant 0 : i32
    %c0_i32_1 = arith.constant 0 : i32
    return %arg0, %c0_i32, %c0_i32_0 : i32, i32, i32
  }
}

</mosaic_0001>

<bundles_post_ra>
// kernel: tpu_custom_call.1
= control target key start
LH: loop header
LB: loop body
LE: loop exit
PB: predicated region body
PF: predicated region fallthrough
CT: control target
= control target key end

     0   :  { %8 = vsyncpa [#allocation5], 0  ;;  %s1174_s0 = inlined_call_operand.hbm [shape: f32[2,64,256], index: 0, kind: input, shape index: {}]   ;;  %s1175_s1 = inlined_call_operand.vmem [shape: f32[64,2], index: 1, kind: input, shape index: {}]   ;;  %s1176_s2 = inlined_call_operand.vmem [shape: f32[2,64], index: 2, kind: input, shape index: {}]   ;;  %s1177_s3 = inlined_call_operand.hbm [shape: f32[2,1,64], index: 3, kind: output, shape index: {}]  }
   0x1   :  { %10 = vsyncpa [#allocation5 + $0x1], 0 }
   0x2   :  { %11 = vsyncpa [#allocation6], 0 }
   0x3   :  { %13 = vsyncpa [#allocation6 + $0x1], 0  ;;  %s948_s12 = smov 0   ;;  %s950_s13 = smov 0  }
   0x4   :  { %s952_s14 = smov 0   ;;  %s954_s15 = smov 0  }
   0x5   :  { %s956_s16 = smov 0   ;;  %s958_s17 = smov 0  }
   0x6   :  { %s960_s18 = smov 0   ;;  %s962_s19 = smov 0  }
   0x7   :  { %s964_s20 = smov 0   ;;  %s966_s21 = smov 0  }
   0x8   :  { %s968_s22 = smov 0  }
   0x9 LB: > { %1181 = sst [smem:[#allocation10_spill]] %s897_s17  ;;  %s601_s23 = sadd.s32 4294967295, %s917_s22   ;;  %s917_s22 = sphi %s968_s22, %s19_s22   ;;  %s913_s21 = sphi %s966_s21, %s1202_s21   ;;  %s909_s20 = sphi %s964_s20, %s1201_s20   ;;  %s905_s19 = sphi %s962_s19, %s1200_s19   ;;  %s901_s18 = sphi %s960_s18, %s1199_s18   ;;  %s897_s17 = sphi %s958_s17, %s1191_s17   ;;  %s893_s16 = sphi %s956_s16, %s1198_s16   ;;  %s889_s15 = sphi %s954_s15, %s1197_s15   ;;  %s885_s14 = sphi %s952_s14, %s1196_s14   ;;  %s881_s13 = sphi %s950_s13, %s1195_s13   ;;  %s877_s12 = sphi %s948_s12, %s1194_s12  }
   0xa   : > { %s602_s24 = sadd.s32 4294967294, %s917_s22   ;;  %s28_s25 = sadd.s32 1, %s909_s20 }
   0xb   : > { %s31_s26 = sadd.s32 1, %s913_s21  ;;  %p29_p0 = scmp.ge.s32.totalorder %s28_s25, 2 }
   0xc   : > { %s40_s27 = sadd.s32 1, %s897_s17  ;;  %p47_p1 = scmp.ne.s32.totalorder %s897_s17, %s893_s16 }
   0xd   : > { %p48_p2 = scmp.eq.s32.totalorder %s917_s22, 0  ;;  %s1204_s25 = smov (%p29_p0, %s28_s25), 0 }
   0xe   : > { %1182 = sst [smem:[#allocation11_spill]] %s1204_s25  ;;  %s1206_s26 = smov (!%p29_p0, %s31_s26), %s913_s21 }
   0xf   : > { %s36_s28 = ssub.s32 %s909_s20, %s1204_s25  ;;  %p1014_p3 = por %p48_p2, %p47_p1 }
  0x10   : > { %p33_p4 = scmp.ge.s32.totalorder %s1206_s26, 2  ;;  %p53_p5 = scmp.ne.s32.totalorder %s893_s16, %s889_s15 }
  0x11   : > { %p54_p6 = scmp.eq.s32.totalorder %s601_s23, 0  ;;  %s108_s30 = sadd.s32 1, %s885_s14 }
  0x12   : > { %s1208_s26 = smov (%p33_p4, %s1206_s26), 0  ;;  %p118_p8 = scmp.ne.s32.totalorder %s885_s14, %s881_s13 }
  0x13   : > { %1184 = sst [smem:[#allocation12_spill]] %s1208_s26  ;;  %p1022_p7 = por %p54_p6, %p53_p5 }
  0x14   : > { %s35_s5 = ssub.s32 %s913_s21, %s1208_s26  ;;  %p119_p9 = scmp.eq.s32.totalorder %s601_s23, 3 }
  0x15   : > { %s37_s6 = sor.u32 %s36_s28, %s35_s5  ;;  %p106_p10 = scmp.eq.s32.totalorder %s35_s5, 0 }
  0x16   : > { %p38_p11 = scmp.eq.s32.totalorder %s37_s6, 0  ;;  %p1030_p12 = por %p119_p9, %p118_p8 }
  0x17   : > { %s1035_s8 = scalar_select %p106_p10, %s885_s14, %s108_s30  }
  0x18   : > { %s1038_s9 = scalar_select %p38_p11, %s897_s17, %s40_s27  }
  0x19   : > { %p124_p13 = scmp.ne.s32.totalorder %s881_s13, %s877_s12  ;;  %p125_p0 = scmp.eq.s32.totalorder %s602_s24, 3 }
  0x1a   : > { %1187 = sst [smem:[#allocation13_spill]] %s1038_s9  ;;  %p667_p1 = scmp.lt.s32.totalorder %s917_s22, 4 }
  0x1b   : > { %p1043_p2 = por %p125_p0, %p124_p13  ;;  %s151_s11 = sand.u32 1, %s897_s17  }
  0x1c   : > { %s605_s15 = sshll.u32 %s151_s11, 6  ;;  %s606_s23 = sshll.u32 %s913_s21, 4 }
  0x1d   : > { %s160_s28 = sadd.s32 %s909_s20, %s606_s23  ;;  %s155_s5 = scalar_lea.vmem [#allocation4], %s605_s15 }
  0x1e   : > { %s163_s6 = sshll.u32 %s155_s5, 4  ;;  %s607_s26 = sshll.u32 %s160_s28, 7  ;;  %s164_s6 = int_to_ptr.vmem [resolvable:$true] %s163_s6 }
  0x1f   : > { %s162_s27 = scalar_lea.hbm %s1174_s0, %s607_s26  ;;  %p1055_p4 = pnand %p667_p1, %p1014_p3 }
  0x20   : > { %s152_s9 = scalar_lea.sflag [#allocation5], %s151_s11  ;;  %s782_s17 = scalar_lea.vmem %s164_s6, 1024 }
  0x21   : > { %p771_p5 = pneg %p1055_p4  ;;  %p783_p6 = scmp.ne.s32.totalorder %s164_s6, %s782_s17 }
  0x22   : > { %s919_s15 = smov [#allocation4]  }
  0x23   : > { %p785_p8 = pnand %p783_p6, %p771_p5  ;;  %s787_s23 = sshll.u32 %s919_s15, 4  ;;  %s788_s23 = int_to_ptr.vmem [resolvable:$false] %s787_s23 }
  0x24   : > { %s789_s28 = scalar_lea.vmem %s788_s23, 2048  ;;  %p790_p10 = scmp.lt.s32.totalorder %s164_s6, %s788_s23 }
  0x25   : > { %p786_p9 = pneg %p785_p8  ;;  %p791_p11 = scmp.lt.s32.totalorder %s789_s28, %s782_s17 }
  0x27   : > { %p792_p13 = por %p791_p11, %p790_p10 }
  0x29   : > { %p793_p0 = pnand %p792_p13, %p786_p9 }
  0x2b   : > { %796 = shalt.err (!%p793_p0)
}
  0x2c   : > { %s920_s25 = smov 256   ;;  %s921_s26 = smov 128  }
  0x2d   : > { %s922_s29 = smov 8   ;;  %p608_p3 = scmp.ge.s32.totalorder %s917_s22, 1 }
  0x2e   : > { %662 = dma.hbm_to_vmem [thread:$0]  (!%p1055_p4), %s162_s27, 1024, %s164_s6, %s152_s9, %s920_s25, %s921_s26, %s922_s29  }
  0x2f   : > { %p171_p1 = scmp.lt.s32.totalorder %s917_s22, 5 }
  0x31   : > { %p172_p5 = pnand %p608_p3, %p171_p1 }
  0x32   : > { %s177_s11 = sand.u32 (!%p172_p5), 1, %s893_s16  }
  0x33   : > { %175 = sbr.rel (%p172_p5) target bundleno = 806 (0x326), region = 32  ;;  %s609_s5 = sshll.u32 (!%p172_p5), %s177_s11, 6 }
  0x34   : > { %s178_s17 = scalar_lea.sflag (!%p172_p5), [#allocation5], %s177_s11  ;;  %s1066_s30 = scalar_lea.vmem (!%p172_p5), [#allocation4], %s609_s5 }
  0x38   : > { %868 = dma.done.wait (%p1022_p7), %s178_s17, 1024  }
  0x39   : > { %870 = vsyncadd (%p1022_p7), %s178_s17, 4294966272  ;;  %s201_s24 = sand.u32 1, %s881_s13   ;;  %p610_p4 = scmp.ne.s32.totalorder %s901_s18, 0 }
  0x3a   : > { %s1075_s9 = scalar_lea.vmem [#allocation7], %s201_s24 }
  0x3b   : > { %206 = sbr.rel (%p610_p4) target bundleno = 66 (0x42), region = 40 }
  0x40   : > { %vm207_vm0 = vcmask 516096   ;;  %v923_v0 = vmov 0.0   ;;  %v924_v1 = vmov -inf  }
  0x41   : > { %208 = vst.msk [vmem:[#allocation2] sm:$0x1] %vm207_vm0, %v923_v0  ;;  %209 = vst.msk [vmem:[#allocation3] sm:$0x1] %vm207_vm0, %v924_v1 }
  0x42 PF: > { %v210_v2 = vld [vmem:[%s1066_s30] sm:$0xff]  ;;  %v212_v3 = vld [vmem:[%s1066_s30 + $0x10] sm:$0xff]  ;;  %v211_v4 = vld [vmem:[%s1066_s30 + $0x8] sm:$0xff]  ;;  %vm268_vm1 = vcmask 516096   ;;  %p611_p7 = scmp.ne.s32.totalorder %s901_s18, 1 }
  0x43   : > { %219 = vadd.xlane.f32.xlu0 %v210_v2  ;;  %223 = vadd.xlane.f32.xlu1 %v212_v3  ;;  %v213_v5 = vld [vmem:[%s1066_s30 + $0x18] sm:$0xff]  ;;  %v214_v6 = vld [vmem:[%s1066_s30 + $0x20] sm:$0xff]  ;;  %v215_v7 = vld [vmem:[%s1066_s30 + $0x28] sm:$0xff] }
  0x44   : > { %v216_v8 = vld [vmem:[%s1066_s30 + $0x30] sm:$0xff]  ;;  %v217_v9 = vld [vmem:[%s1066_s30 + $0x38] sm:$0xff] }
  0x47   : > { %221 = vadd.xlane.f32.xlu0 %v211_v4  ;;  %225 = vadd.xlane.f32.xlu1 %v213_v5 }
  0x48   : > { %v218_v26 = vld [vmem:[#allocation2] sm:$0x1]  ;;  %v270_v29 = vld [vmem:[#allocation3] sm:$0x1] }
  0x4b   : > { %271 = vmax.xlane.f32.xlu0 %v210_v2  ;;  %273 = vmax.xlane.f32.xlu1 %v211_v4 }
  0x4f   : > { %275 = vmax.xlane.f32.xlu0 %v212_v3  ;;  %277 = vmax.xlane.f32.xlu1 %v213_v5 }
  0x53   : > { %279 = vmax.xlane.f32.xlu1 %v214_v6  ;;  %227 = vadd.xlane.f32.xlu0 %v214_v6 }
  0x57   : > { %281 = vmax.xlane.f32.xlu1 %v215_v7  ;;  %229 = vadd.xlane.f32.xlu0 %v215_v7 }
  0x5b   : > { %283 = vmax.xlane.f32.xlu1 %v216_v8  ;;  %231 = vadd.xlane.f32.xlu0 %v216_v8 }
  0x5f   : > { %285 = vmax.xlane.f32.xlu1 %v217_v9  ;;  %233 = vadd.xlane.f32.xlu0 %v217_v9 }
  0xcc   : > { %v220_v10 = vpop.xlane.xlu0 %219  ;;  %v224_v11 = vpop.xlane.xlu1 %223 }
  0xcd   : > { %235 = vxpose.xlu0.b32.start [1/8] (short) (narrow) %v220_v10, 8 }
  0xd0   : > { %v222_v12 = vpop.xlane.xlu0 %221  ;;  %v226_v13 = vpop.xlane.xlu1 %225 }
  0xd1   : > { %236 = vxpose.xlu0.b32.cont [2/8] (short) (narrow) %v222_v12, 8 }
  0xd4   : > { %v272_v14 = vpop.xlane.xlu0 %271  ;;  %v274_v15 = vpop.xlane.xlu1 %273 }
  0xd5   : > { %237 = vxpose.xlu0.b32.cont [3/8] (short) (narrow) %v224_v11, 8  ;;  %287 = vxpose.xlu1.b32.start [1/8] (short) (narrow) %v272_v14, 8 }
  0xd8   : > { %v276_v16 = vpop.xlane.xlu0 %275  ;;  %v278_v17 = vpop.xlane.xlu1 %277 }
  0xd9   : > { %238 = vxpose.xlu0.b32.cont [4/8] (short) (narrow) %v226_v13, 8  ;;  %288 = vxpose.xlu1.b32.cont [2/8] (short) (narrow) %v274_v15, 8 }
  0xdc   : > { %v280_v18 = vpop.xlane.xlu1 %279  ;;  %v228_v19 = vpop.xlane.xlu0 %227 }
  0xdd   : > { %289 = vxpose.xlu1.b32.cont [3/8] (short) (narrow) %v276_v16, 8  ;;  %239 = vxpose.xlu0.b32.cont [5/8] (short) (narrow) %v228_v19, 8 }
  0xe0   : > { %v230_v20 = vpop.xlane.xlu0 %229  ;;  %v282_v21 = vpop.xlane.xlu1 %281 }
  0xe1   : > { %290 = vxpose.xlu1.b32.cont [4/8] (short) (narrow) %v278_v17, 8  ;;  %240 = vxpose.xlu0.b32.cont [6/8] (short) (narrow) %v230_v20, 8 }
  0xe4   : > { %v232_v22 = vpop.xlane.xlu0 %231  ;;  %v284_v23 = vpop.xlane.xlu1 %283 }
  0xe5   : > { %291 = vxpose.xlu1.b32.cont [5/8] (short) (narrow) %v280_v18, 8  ;;  %241 = vxpose.xlu0.b32.cont [7/8] (short) (narrow) %v232_v22, 8 }
  0xe8   : > { %v234_v24 = vpop.xlane.xlu0 %233  ;;  %v286_v25 = vpop.xlane.xlu1 %285 }
  0xe9   : > { %292 = vxpose.xlu1.b32.cont [6/8] (short) (narrow) %v282_v21, 8  ;;  %242 = vxpose.xlu0.b32.end [8/8] (short) (narrow) %v234_v24, 8 }
  0xed   : > { %293 = vxpose.xlu1.b32.cont [7/8] (short) (narrow) %v284_v23, 8 }
  0xf1   : > { %294 = vxpose.xlu1.b32.end [8/8] (short) (narrow) %v286_v25, 8 }
 0x149   : > { %v251_v27 = vpop.trf.xlu0 }
 0x14a   : > { %v267_v28 = vadd.f32 %v251_v27, %v218_v26 }
 0x14c   : > { %269 = vst.msk [vmem:[#allocation2] sm:$0x1] %vm268_vm1, %v267_v28 }
 0x150   : > { %324 = sbr.rel (%p611_p7) target bundleno = 783 (0x30f), region = 44 }
 0x151   : > { %v303_v30 = vpop.trf.xlu1 }
 0x152   : > { %v319_v31 = vmax.f32 %v270_v29, %v303_v30 }
 0x154   : > { %320 = vst.msk [vmem:[#allocation3] sm:$0x1] %vm268_vm1, %v319_v31 }
 0x155   : > { %v343_v32 = vld [vmem:[%s1175_s1 + $0x38] sm:$0xff]  ;;  %v925_v33 = vmov 0.0   ;;  %v342_v34 = vld [vmem:[%s1175_s1 + $0x30] sm:$0xff]  ;;  %vm926_vm2 = vmmov 0   ;;  %v341_v35 = vld [vmem:[%s1175_s1 + $0x28] sm:$0xff]  ;;  %vm334_vm3 = vcmask 1040384  }
 0x156   : > { %631 = vmatprep.subr.mxu0 %v925_v33  ;;  %647 = vmatprep.mubr.msk.f32.mxu0 %vm926_vm2, %v925_v33  ;;  %v340_v36 = vld [vmem:[%s1175_s1 + $0x20] sm:$0xff]  ;;  %v339_v37 = vld [vmem:[%s1175_s1 + $0x18] sm:$0xff]  ;;  %v338_v39 = vld [vmem:[%s1175_s1 + $0x10] sm:$0xff]  ;;  %vm344_vm4 = vcmask 523264   ;;  %vm424_vm5 = vcmask 1041408   ;;  %vm420_vm6 = vcmask 15360  }
 0x157   : > { %632 = vmatpush3.msra.mxu0 %v343_v32  ;;  %650 = vmatprep.subr.mxu1 %v925_v33  ;;  %v325_v38 = vld [vmem:[#allocation2] sm:$0x1]  ;;  %v337_v41 = vld [vmem:[%s1175_s1 + $0x8] sm:$0xff] }
 0x158   : > { %633 = vmatprep.subr.mxu0 %v925_v33  ;;  %652 = vmatprep.mubr.msk.f32.mxu1 %vm926_vm2, %v925_v33  ;;  %v326_v40 = vmul.f32 0.00390625, %v325_v38  ;;  %v336_v43 = vld [vmem:[%s1175_s1] sm:$0xff] }
 0x159   : > { %634 = vmatpush3.msra.mxu0 %v342_v34  ;;  %v419_v45 = vld [vmem:[%s1176_s2] sm:$0x3] }
 0x15a   : > { %635 = vmatprep.subr.mxu0 %v925_v33  ;;  %651 = vmatpush3.msk.msra.mxu1 %vm424_vm5, %v419_v45 }
 0x15b   : > { %636 = vmatpush3.msra.mxu0 %v341_v35  ;;  %v612_v42 = vld [vmem:[#allocation3] ss:$0 sm:$0xff] }
 0x15c   : > { %637 = vmatprep.subr.mxu0 %v925_v33  ;;  %v335_v44 = vsel %vm334_vm3, %v326_v40, %v612_v42 }
 0x15d   : > { %638 = vmatpush3.msra.mxu0 %v340_v36 }
 0x15e   : > { %639 = vmatprep.subr.mxu0 %v925_v33 }
 0x15f   : > { %640 = vmatpush3.msra.mxu0 %v339_v37 }
 0x160   : > { %641 = vmatprep.subr.mxu0 %v925_v33 }
 0x161   : > { %642 = vmatpush3.msra.mxu0 %v338_v39 }
 0x162   : > { %643 = vmatprep.subr.mxu0 %v925_v33 }
 0x163   : > { %644 = vmatpush3.msra.mxu0 %v337_v41 }
 0x164   : > { %645 = vmatprep.subr.mxu0 %v925_v33 }
 0x165   : > { %646 = vmatpush3.msra.mxu0 %v336_v43 }
 0x166   : > { %648 = vmatmul.mubr.msk.f32.vlgmr.msra.gmra.mxu0 %vm344_vm4, %v335_v44 }
 0x226   : > { %v414_v46 = vpop.f32.mrf.mxu0 }
 0x227   : > { %v418_v47 = vmax.f32 %v414_v46, 0.0 }
 0x228   : > { %v649_v48 = vpop.f32.mrf.mxu0 }
 0x229   : > { %653 = vmatmul.mubr.msk.f32.vlgmr.msra.gmra.mxu1 %vm420_vm6, %v418_v47 }
 0x2e9   : > { %v494_v49 = vpop.f32.mrf.mxu1 }
 0x2ea   : > { %v499_v50 = vrot.slane %v494_v49, 1 }
 0x2eb   : > { %v654_v51 = vpop.f32.mrf.mxu1 }
 0x2ec   : > { %v501_v52 = vadd.f32 %v499_v50, %v494_v49 }
 0x2ee   : > { %v616_v53 = vmul.f32 -1.442695, %v501_v52 }
 0x2f0   : > { %765 = vpow2.f32 %v616_v53 }
 0x2fd   : > { %v766_v54 = vpop.eup %765 }
 0x2fe   : > { %v505_v55 = vadd.f32 1.0, %v766_v54 }
 0x300   : > { %767 = vrcp.f32 %v505_v55 }
 0x30d   : > { %v768_v56 = vpop.eup %767 }
 0x30e   : > { %508 = vst.msk [vmem:[%s1075_s9] sm:$0x1] %vm268_vm1, %v768_v56 }
 0x30f PF: > { %s617_s23 = sshll.u32 %s905_s19, 4  ;;  %s522_s26 = sshll.u32 %s1075_s9, 4  ;;  %s523_s26 = int_to_ptr.vmem [resolvable:$true] %s522_s26 }
 0x310   : > { %s520_s25 = scalar_lea.hbm %s1177_s3, %s617_s23  ;;  %s510_s29 = scalar_lea.sflag [#allocation6], %s201_s24 }
 0x311   : > { %s797_s11 = scalar_lea.vmem %s523_s26, 16  ;;  %s927_s5 = smov [#allocation7]  }
 0x312   : > { %p798_p6 = scmp.ne.s32.totalorder %s523_s26, %s797_s11  ;;  %s801_s17 = sshll.u32 %s927_s5, 4  ;;  %s802_s17 = int_to_ptr.vmem [resolvable:$false] %s801_s17 }
 0x313   : > { %s803_s30 = scalar_lea.vmem %s802_s17, 32  ;;  %p804_p10 = scmp.lt.s32.totalorder %s523_s26, %s802_s17 }
 0x314   : > { %p799_p8 = pnand %p798_p6, %p1030_p12  ;;  %p805_p11 = scmp.lt.s32.totalorder %s803_s30, %s797_s11 }
 0x316   : > { %p800_p9 = pneg %p799_p8  ;;  %p806_p13 = por %p805_p11, %p804_p10 }
 0x318   : > { %p807_p0 = pnand %p806_p13, %p800_p9 }
 0x31a   : > { %810 = shalt.err (!%p807_p0)
}
 0x31b   : > { %s811_s19 = scalar_lea.hbm %s520_s25, 16  ;;  %s815_s4 = scalar_lea.hbm %s1177_s3, 32 }
 0x31c   : > { %p812_p3 = scmp.ne.s32.totalorder %s520_s25, %s811_s19  ;;  %p816_p4 = scmp.lt.s32.totalorder %s520_s25, %s1177_s3 }
 0x31d   : > { %p817_p7 = scmp.lt.s32.totalorder %s815_s4, %s811_s19 }
 0x31e   : > { %p813_p1 = pnand %p812_p3, %p1030_p12 }
 0x31f   : > { %p818_p6 = por %p817_p7, %p816_p4 }
 0x320   : > { %p814_p5 = pneg %p813_p1 }
 0x322   : > { %p819_p8 = pnand %p818_p6, %p814_p5 }
 0x324   : > { %822 = shalt.err (!%p819_p8)
}
 0x325   : > { %657 = dma.vmem_to_hbm [thread:$0]  (%p1030_p12), %s523_s26, 16, %s520_s25, %s510_s29  }
 0x326 PF: > { %p668_p9 = scmp.ge.s32.totalorder %s917_s22, 2  ;;  %s534_s15 = sand.u32 1, %s877_s12  }
 0x327   : > { %s535_s23 = scalar_lea.sflag [#allocation6], %s534_s15 }
 0x328   : > { %p664_p10 = pnand %p668_p9, %p1043_p2 }
 0x32a   : > { %p665_p11 = pneg %p664_p10 }
 0x32c   : > { %872 = dma.done.wait (%p665_p11), %s535_s23, 16  }
 0x32d   : > { %874 = vsyncadd (%p665_p11), %s535_s23, 4294967280  ;;  %s19_s22 = sadd.s32 1, %s917_s22   ;;  %s1190_s7 = sld [smem:[#allocation10_spill]] }
 0x32e   : > { %p16_p13 = scmp.ge.s32.totalorder %s19_s22, 6   ;;  %s1191_s17 = sld [smem:[#allocation13_spill]] }
 0x32f   : > { %s1192_s28 = sld [smem:[#allocation11_spill]]  ;;  %s1194_s12 = smov %s881_s13 }
 0x330   : > { %s1193_s25 = sld [smem:[#allocation12_spill]]  ;;  %s1195_s13 = smov %s885_s14 }
 0x331   : > { %s1196_s14 = smov %s1035_s8  ;;  %s1197_s15 = smov %s893_s16 }
 0x332   : > { %s1199_s18 = smov %s909_s20  ;;  %s1200_s19 = smov %s913_s21 }
 0x333   : > { %s1198_s16 = smov %s1190_s7  ;;  %18 = sbr.rel (!%p16_p13) target bundleno = 9 (0x9), region = 85 }
 0x335   : > { %s1201_s20 = smov %s1192_s28 }
 0x336   : > { %s1202_s21 = smov %s1193_s25 }
 0x338   :  { %539 = vsyncpa [#allocation5], 1 }
 0x339   :  { %541 = vsyncpa [#allocation5 + $0x1], 1 }
 0x33a   :  { %542 = vsyncpa [#allocation6], 1 }
 0x33b   :  { %544 = vsyncpa [#allocation6 + $0x1], 1 }

</bundles_post_ra>
